<compile_context>
chip_gen: v6e
topology: v6e:2x2x1
jax: 0.10.0
libtpu: 0.0.40
codegen_flags: <defaults>
</compile_context>

<pallas_src>
import functools

import jax
import jax.numpy as jnp
from jax.experimental import pallas as pl
from jax.experimental.pallas import tpu as pltpu

LANE = 128


def _round_up(x, m):
    return (x + m - 1) // m * m


# ---------------------------------------------------------------------------
# Pallas kernel: lane-dense complex channel contraction over a tile of modes.
#   xr/xi : (B, Cin, TM)    real / imag of the selected Fourier modes
#   wr/wi : (Cin, Cout, TM) real / imag of the spectral weights
#   or/oi : (B, Cout, TM)
#   out[b, o, m] = sum_i x[b, i, m] * w[i, o, m]   (complex arithmetic)
# ---------------------------------------------------------------------------
def _cmul_kernel(xr_ref, xi_ref, wr_ref, wi_ref, or_ref, oi_ref):
    xr = xr_ref[...]
    xi = xi_ref[...]
    wr = wr_ref[...]
    wi = wi_ref[...]

    B, Cin, TM = xr.shape
    Cout = wr.shape[1]

    # Gauss 3-mult complex product:
    #   t1 = xr*wr, t2 = xi*wi, t3 = (xr+xi)*(wr+wi)
    #   real = t1 - t2 ; imag = t3 - t1 - t2
    xs = xr + xi                     # (B, Cin, TM)
    ws = wr + wi                     # (Cin, Cout, TM)

    t1 = jnp.zeros((B, Cout, TM), jnp.float32)
    t2 = jnp.zeros((B, Cout, TM), jnp.float32)
    t3 = jnp.zeros((B, Cout, TM), jnp.float32)
    # Cin is small for FNO widths, so a static unroll keeps every multiply a
    # full-width lane-dense VPU FMA (no masked vregs, no MXU padding waste).
    for i in range(Cin):
        a_r = xr[:, i, :][:, None, :]      # (B, 1, TM)  -> sublane broadcast
        a_i = xi[:, i, :][:, None, :]
        a_s = xs[:, i, :][:, None, :]
        b_r = wr[i][None, :, :]            # (1, Cout, TM)
        b_i = wi[i][None, :, :]
        b_s = ws[i][None, :, :]
        t1 = t1 + a_r * b_r
        t2 = t2 + a_i * b_i
        t3 = t3 + a_s * b_s

    or_ref[...] = t1 - t2
    oi_ref[...] = t3 - t1 - t2


def _complex_mode_contract(xr, xi, wr, wi, tm):
    """xr/xi: (B,Cin,Mpad), wr/wi: (Cin,Cout,Mpad) -> (B,Cout,Mpad) real/imag."""
    B, Cin, Mpad = xr.shape
    Cout = wr.shape[1]
    assert Mpad % tm == 0 and tm % LANE == 0

    x_spec = pl.BlockSpec((B, Cin, tm), lambda m: (0, 0, m))
    w_spec = pl.BlockSpec((Cin, Cout, tm), lambda m: (0, 0, m))
    o_spec = pl.BlockSpec((B, Cout, tm), lambda m: (0, 0, m))

    out_shape = (jax.ShapeDtypeStruct((B, Cout, Mpad), jnp.float32),
                 jax.ShapeDtypeStruct((B, Cout, Mpad), jnp.float32))

    return pl.pallas_call(
        _cmul_kernel,
        out_shape=out_shape,
        grid_spec=pltpu.PrefetchScalarGridSpec(
            num_scalar_prefetch=0,
            grid=(Mpad // tm,),
            in_specs=[x_spec, x_spec, w_spec, w_spec],
            out_specs=[o_spec, o_spec],
        ),
        compiler_params=pltpu.CompilerParams(
            dimension_semantics=("parallel",)),
    )(xr, xi, wr, wi)


# ---------------------------------------------------------------------------
# Full SpectralConv2d_fast forward.
# ---------------------------------------------------------------------------
@functools.partial(jax.jit, static_argnames=("modes1", "modes2"))
def spectral_conv2d_fast(x, w1_r, w1_i, w2_r, w2_i, *, modes1, modes2):
    """x: (B, Cin, H, W) f32; w*_r/w*_i: (Cin, Cout, modes1, modes2) f32."""
    B, Cin, H, W = x.shape
    Cout = w1_r.shape[1]
    Wf = W // 2 + 1
    m1, m2 = modes1, modes2
    M = 2 * m1 * m2

    # FFT glue (no Pallas FFT primitive).
    x_ft = jnp.fft.rfft2(x)                                   # (B, Cin, H, Wf) c64

    # Gather the two retained corner blocks.  Concatenating along the row axis
    # makes the flattened (block, row, col) mode index contiguous, so getting
    # the mode axis onto lanes is a pure reshape (no transposes).
    x_sel = jnp.concatenate(
        [x_ft[:, :, :m1, :m2], x_ft[:, :, H - m1:, :m2]], axis=2)  # (B,Cin,2*m1,m2)
    x_sel = x_sel.reshape(B, Cin, M)
    xr = jnp.real(x_sel).astype(jnp.float32)
    xi = jnp.imag(x_sel).astype(jnp.float32)

    # Weights in matching mode order: (Cin, Cout, M).
    wr = jnp.concatenate([w1_r.reshape(Cin, Cout, m1 * m2),
                          w2_r.reshape(Cin, Cout, m1 * m2)], axis=-1)
    wi = jnp.concatenate([w1_i.reshape(Cin, Cout, m1 * m2),
                          w2_i.reshape(Cin, Cout, m1 * m2)], axis=-1)

    # Pad the mode (lane) axis to a multiple of the lane tile TM.
    tm = 512 if M >= 512 else _round_up(M, LANE)
    Mpad = _round_up(M, tm)
    pad = Mpad - M
    if pad:
        pw = ((0, 0), (0, 0), (0, pad))
        xr = jnp.pad(xr, pw)
        xi = jnp.pad(xi, pw)
        wr = jnp.pad(wr, pw)
        wi = jnp.pad(wi, pw)

    # Hot path in Pallas: lane-dense complex contraction over channels.
    out_r, out_i = _complex_mode_contract(xr, xi, wr, wi, tm)  # (B,Cout,Mpad) x2

    out_c = (out_r[:, :, :M] + 1j * out_i[:, :, :M]).astype(jnp.complex64)
    out_c = out_c.reshape(B, Cout, 2 * m1, m2)                 # rows: [top; bottom]

    # Scatter into the full spectrum and inverse FFT.
    out_ft = jnp.zeros((B, Cout, H, Wf), dtype=jnp.complex64)
    out_ft = out_ft.at[:, :, :m1, :m2].set(out_c[:, :, :m1])
    out_ft = out_ft.at[:, :, H - m1:, :m2].set(out_c[:, :, m1:])
    return jnp.fft.irfft2(out_ft, s=(H, W))                    # (B, Cout, H, W) f32


# Pure-JAX reference (mirrors the PyTorch module) for a correctness check.
def _reference(x, w1, w2, modes1, modes2):
    B, Cin, H, W = x.shape
    Cout = w1.shape[1]
    Wf = W // 2 + 1
    x_ft = jnp.fft.rfft2(x)
    out_ft = jnp.zeros((B, Cout, H, Wf), dtype=jnp.complex64)
    out_ft = out_ft.at[:, :, :modes1, :modes2].set(
        jnp.einsum('bixy,ioxy->boxy', x_ft[:, :, :modes1, :modes2], w1))
    out_ft = out_ft.at[:, :, H - modes1:, :modes2].set(
        jnp.einsum('bixy,ioxy->boxy', x_ft[:, :, H - modes1:, :modes2], w2))
    return jnp.fft.irfft2(out_ft, s=(H, W))


if __name__ == "__main__":
    # Small shapes consistent with the module.
    B, Cin, Cout = 2, 4, 4
    H, W = 16, 16
    modes1, modes2 = 4, 4

    key = jax.random.PRNGKey(0)
    kx, k1r, k1i, k2r, k2i = jax.random.split(key, 5)

    x = jax.random.normal(kx, (B, Cin, H, W), dtype=jnp.float32)

    # Deterministic init mirroring scale * torch.rand(..., dtype=cfloat).
    scale = 1.0 / (Cin * Cout)
    w1_r = scale * jax.random.uniform(k1r, (Cin, Cout, modes1, modes2), jnp.float32)
    w1_i = scale * jax.random.uniform(k1i, (Cin, Cout, modes1, modes2), jnp.float32)
    w2_r = scale * jax.random.uniform(k2r, (Cin, Cout, modes1, modes2), jnp.float32)
    w2_i = scale * jax.random.uniform(k2i, (Cin, Cout, modes1, modes2), jnp.float32)

    out = spectral_conv2d_fast(x, w1_r, w1_i, w2_r, w2_i,
                               modes1=modes1, modes2=modes2)
    out = jax.block_until_ready(out)

    ref = _reference(x, (w1_r + 1j * w1_i).astype(jnp.complex64),
                     (w2_r + 1j * w2_i).astype(jnp.complex64), modes1, modes2)
    ref = jax.block_until_ready(ref)

    assert out.shape == (B, Cout, H, W)
    assert jnp.max(jnp.abs(out - ref)) < 1e-4

    print("KERNEL_OK")
</pallas_src>

<mosaic_0001>
module attributes {stable_mosaic.version = 11 : i64} {
  func.func @_cmul_kernel(%arg0: i32, %arg1: memref<2x4x128xf32, #tpu.memory_space<vmem>>, %arg2: memref<2x4x128xf32, #tpu.memory_space<vmem>>, %arg3: memref<4x4x128xf32, #tpu.memory_space<vmem>>, %arg4: memref<4x4x128xf32, #tpu.memory_space<vmem>>, %arg5: memref<2x4x128xf32, #tpu.memory_space<vmem>>, %arg6: memref<2x4x128xf32, #tpu.memory_space<vmem>>) attributes {dimension_semantics = [#tpu.dimension_semantics<parallel>], iteration_bounds = array<i64: 1>, scalar_prefetch = 0 : i64, scratch_operands = 0 : i64, tpu.core_type = #tpu.core_type<tc>, window_params = [{transform_indices = @transform_0, window_bounds = array<i64: 2, 4, 128>}, {transform_indices = @transform_1, window_bounds = array<i64: 2, 4, 128>}, {transform_indices = @transform_2, window_bounds = array<i64: 4, 4, 128>}, {transform_indices = @transform_3, window_bounds = array<i64: 4, 4, 128>}, {transform_indices = @transform_4, window_bounds = array<i64: 2, 4, 128>}, {transform_indices = @transform_5, window_bounds = array<i64: 2, 4, 128>}]} {
    %c0 = arith.constant 0 : index
    %c0_0 = arith.constant 0 : index
    %c0_1 = arith.constant 0 : index
    %0 = vector.load %arg1[%c0, %c0_0, %c0_1] : memref<2x4x128xf32, #tpu.memory_space<vmem>>, vector<2x4x128xf32>
    %c0_2 = arith.constant 0 : index
    %c0_3 = arith.constant 0 : index
    %c0_4 = arith.constant 0 : index
    %1 = vector.load %arg2[%c0_2, %c0_3, %c0_4] : memref<2x4x128xf32, #tpu.memory_space<vmem>>, vector<2x4x128xf32>
    %c0_5 = arith.constant 0 : index
    %c0_6 = arith.constant 0 : index
    %c0_7 = arith.constant 0 : index
    %2 = vector.load %arg3[%c0_5, %c0_6, %c0_7] : memref<4x4x128xf32, #tpu.memory_space<vmem>>, vector<4x4x128xf32>
    %c0_8 = arith.constant 0 : index
    %c0_9 = arith.constant 0 : index
    %c0_10 = arith.constant 0 : index
    %3 = vector.load %arg4[%c0_8, %c0_9, %c0_10] : memref<4x4x128xf32, #tpu.memory_space<vmem>>, vector<4x4x128xf32>
    %4 = arith.addf %0, %1 : vector<2x4x128xf32>
    %5 = arith.addf %2, %3 : vector<4x4x128xf32>
    %cst = arith.constant 0.000000e+00 : f32
    %6 = vector.broadcast %cst : f32 to vector<2x4x128xf32>
    %cst_11 = arith.constant 0.000000e+00 : f32
    %7 = vector.broadcast %cst_11 : f32 to vector<2x4x128xf32>
    %cst_12 = arith.constant 0.000000e+00 : f32
    %8 = vector.broadcast %cst_12 : f32 to vector<2x4x128xf32>
    %9 = vector.extract_strided_slice %0 {offsets = [0, 0, 0], sizes = [2, 1, 128], strides = [1, 1, 1]} : vector<2x4x128xf32> to vector<2x1x128xf32>
    %10 = vector.shape_cast %9 : vector<2x1x128xf32> to vector<2x128xf32>
    %11 = vector.shape_cast %10 : vector<2x128xf32> to vector<2x1x128xf32>
    %12 = vector.extract_strided_slice %1 {offsets = [0, 0, 0], sizes = [2, 1, 128], strides = [1, 1, 1]} : vector<2x4x128xf32> to vector<2x1x128xf32>
    %13 = vector.shape_cast %12 : vector<2x1x128xf32> to vector<2x128xf32>
    %14 = vector.shape_cast %13 : vector<2x128xf32> to vector<2x1x128xf32>
    %15 = vector.extract_strided_slice %4 {offsets = [0, 0, 0], sizes = [2, 1, 128], strides = [1, 1, 1]} : vector<2x4x128xf32> to vector<2x1x128xf32>
    %16 = vector.shape_cast %15 : vector<2x1x128xf32> to vector<2x128xf32>
    %17 = vector.shape_cast %16 : vector<2x128xf32> to vector<2x1x128xf32>
    %18 = vector.extract_strided_slice %2 {offsets = [0, 0, 0], sizes = [1, 4, 128], strides = [1, 1, 1]} : vector<4x4x128xf32> to vector<1x4x128xf32>
    %19 = vector.shape_cast %18 : vector<1x4x128xf32> to vector<4x128xf32>
    %20 = vector.shape_cast %19 : vector<4x128xf32> to vector<1x4x128xf32>
    %21 = vector.extract_strided_slice %3 {offsets = [0, 0, 0], sizes = [1, 4, 128], strides = [1, 1, 1]} : vector<4x4x128xf32> to vector<1x4x128xf32>
    %22 = vector.shape_cast %21 : vector<1x4x128xf32> to vector<4x128xf32>
    %23 = vector.shape_cast %22 : vector<4x128xf32> to vector<1x4x128xf32>
    %24 = vector.extract_strided_slice %5 {offsets = [0, 0, 0], sizes = [1, 4, 128], strides = [1, 1, 1]} : vector<4x4x128xf32> to vector<1x4x128xf32>
    %25 = vector.shape_cast %24 : vector<1x4x128xf32> to vector<4x128xf32>
    %26 = vector.shape_cast %25 : vector<4x128xf32> to vector<1x4x128xf32>
    %27 = vector.broadcast %11 : vector<2x1x128xf32> to vector<2x4x128xf32>
    %28 = vector.broadcast %20 : vector<1x4x128xf32> to vector<2x4x128xf32>
    %29 = arith.mulf %27, %28 : vector<2x4x128xf32>
    %30 = arith.addf %6, %29 : vector<2x4x128xf32>
    %31 = vector.broadcast %14 : vector<2x1x128xf32> to vector<2x4x128xf32>
    %32 = vector.broadcast %23 : vector<1x4x128xf32> to vector<2x4x128xf32>
    %33 = arith.mulf %31, %32 : vector<2x4x128xf32>
    %34 = arith.addf %7, %33 : vector<2x4x128xf32>
    %35 = vector.broadcast %17 : vector<2x1x128xf32> to vector<2x4x128xf32>
    %36 = vector.broadcast %26 : vector<1x4x128xf32> to vector<2x4x128xf32>
    %37 = arith.mulf %35, %36 : vector<2x4x128xf32>
    %38 = arith.addf %8, %37 : vector<2x4x128xf32>
    %39 = vector.extract_strided_slice %0 {offsets = [0, 1, 0], sizes = [2, 1, 128], strides = [1, 1, 1]} : vector<2x4x128xf32> to vector<2x1x128xf32>
    %40 = vector.shape_cast %39 : vector<2x1x128xf32> to vector<2x128xf32>
    %41 = vector.shape_cast %40 : vector<2x128xf32> to vector<2x1x128xf32>
    %42 = vector.extract_strided_slice %1 {offsets = [0, 1, 0], sizes = [2, 1, 128], strides = [1, 1, 1]} : vector<2x4x128xf32> to vector<2x1x128xf32>
    %43 = vector.shape_cast %42 : vector<2x1x128xf32> to vector<2x128xf32>
    %44 = vector.shape_cast %43 : vector<2x128xf32> to vector<2x1x128xf32>
    %45 = vector.extract_strided_slice %4 {offsets = [0, 1, 0], sizes = [2, 1, 128], strides = [1, 1, 1]} : vector<2x4x128xf32> to vector<2x1x128xf32>
    %46 = vector.shape_cast %45 : vector<2x1x128xf32> to vector<2x128xf32>
    %47 = vector.shape_cast %46 : vector<2x128xf32> to vector<2x1x128xf32>
    %48 = vector.extract_strided_slice %2 {offsets = [1, 0, 0], sizes = [1, 4, 128], strides = [1, 1, 1]} : vector<4x4x128xf32> to vector<1x4x128xf32>
    %49 = vector.shape_cast %48 : vector<1x4x128xf32> to vector<4x128xf32>
    %50 = vector.shape_cast %49 : vector<4x128xf32> to vector<1x4x128xf32>
    %51 = vector.extract_strided_slice %3 {offsets = [1, 0, 0], sizes = [1, 4, 128], strides = [1, 1, 1]} : vector<4x4x128xf32> to vector<1x4x128xf32>
    %52 = vector.shape_cast %51 : vector<1x4x128xf32> to vector<4x128xf32>
    %53 = vector.shape_cast %52 : vector<4x128xf32> to vector<1x4x128xf32>
    %54 = vector.extract_strided_slice %5 {offsets = [1, 0, 0], sizes = [1, 4, 128], strides = [1, 1, 1]} : vector<4x4x128xf32> to vector<1x4x128xf32>
    %55 = vector.shape_cast %54 : vector<1x4x128xf32> to vector<4x128xf32>
    %56 = vector.shape_cast %55 : vector<4x128xf32> to vector<1x4x128xf32>
    %57 = vector.broadcast %41 : vector<2x1x128xf32> to vector<2x4x128xf32>
    %58 = vector.broadcast %50 : vector<1x4x128xf32> to vector<2x4x128xf32>
    %59 = arith.mulf %57, %58 : vector<2x4x128xf32>
    %60 = arith.addf %30, %59 : vector<2x4x128xf32>
    %61 = vector.broadcast %44 : vector<2x1x128xf32> to vector<2x4x128xf32>
    %62 = vector.broadcast %53 : vector<1x4x128xf32> to vector<2x4x128xf32>
    %63 = arith.mulf %61, %62 : vector<2x4x128xf32>
    %64 = arith.addf %34, %63 : vector<2x4x128xf32>
    %65 = vector.broadcast %47 : vector<2x1x128xf32> to vector<2x4x128xf32>
    %66 = vector.broadcast %56 : vector<1x4x128xf32> to vector<2x4x128xf32>
    %67 = arith.mulf %65, %66 : vector<2x4x128xf32>
    %68 = arith.addf %38, %67 : vector<2x4x128xf32>
    %69 = vector.extract_strided_slice %0 {offsets = [0, 2, 0], sizes = [2, 1, 128], strides = [1, 1, 1]} : vector<2x4x128xf32> to vector<2x1x128xf32>
    %70 = vector.shape_cast %69 : vector<2x1x128xf32> to vector<2x128xf32>
    %71 = vector.shape_cast %70 : vector<2x128xf32> to vector<2x1x128xf32>
    %72 = vector.extract_strided_slice %1 {offsets = [0, 2, 0], sizes = [2, 1, 128], strides = [1, 1, 1]} : vector<2x4x128xf32> to vector<2x1x128xf32>
    %73 = vector.shape_cast %72 : vector<2x1x128xf32> to vector<2x128xf32>
    %74 = vector.shape_cast %73 : vector<2x128xf32> to vector<2x1x128xf32>
    %75 = vector.extract_strided_slice %4 {offsets = [0, 2, 0], sizes = [2, 1, 128], strides = [1, 1, 1]} : vector<2x4x128xf32> to vector<2x1x128xf32>
    %76 = vector.shape_cast %75 : vector<2x1x128xf32> to vector<2x128xf32>
    %77 = vector.shape_cast %76 : vector<2x128xf32> to vector<2x1x128xf32>
    %78 = vector.extract_strided_slice %2 {offsets = [2, 0, 0], sizes = [1, 4, 128], strides = [1, 1, 1]} : vector<4x4x128xf32> to vector<1x4x128xf32>
    %79 = vector.shape_cast %78 : vector<1x4x128xf32> to vector<4x128xf32>
    %80 = vector.shape_cast %79 : vector<4x128xf32> to vector<1x4x128xf32>
    %81 = vector.extract_strided_slice %3 {offsets = [2, 0, 0], sizes = [1, 4, 128], strides = [1, 1, 1]} : vector<4x4x128xf32> to vector<1x4x128xf32>
    %82 = vector.shape_cast %81 : vector<1x4x128xf32> to vector<4x128xf32>
    %83 = vector.shape_cast %82 : vector<4x128xf32> to vector<1x4x128xf32>
    %84 = vector.extract_strided_slice %5 {offsets = [2, 0, 0], sizes = [1, 4, 128], strides = [1, 1, 1]} : vector<4x4x128xf32> to vector<1x4x128xf32>
    %85 = vector.shape_cast %84 : vector<1x4x128xf32> to vector<4x128xf32>
    %86 = vector.shape_cast %85 : vector<4x128xf32> to vector<1x4x128xf32>
    %87 = vector.broadcast %71 : vector<2x1x128xf32> to vector<2x4x128xf32>
    %88 = vector.broadcast %80 : vector<1x4x128xf32> to vector<2x4x128xf32>
    %89 = arith.mulf %87, %88 : vector<2x4x128xf32>
    %90 = arith.addf %60, %89 : vector<2x4x128xf32>
    %91 = vector.broadcast %74 : vector<2x1x128xf32> to vector<2x4x128xf32>
    %92 = vector.broadcast %83 : vector<1x4x128xf32> to vector<2x4x128xf32>
    %93 = arith.mulf %91, %92 : vector<2x4x128xf32>
    %94 = arith.addf %64, %93 : vector<2x4x128xf32>
    %95 = vector.broadcast %77 : vector<2x1x128xf32> to vector<2x4x128xf32>
    %96 = vector.broadcast %86 : vector<1x4x128xf32> to vector<2x4x128xf32>
    %97 = arith.mulf %95, %96 : vector<2x4x128xf32>
    %98 = arith.addf %68, %97 : vector<2x4x128xf32>
    %99 = vector.extract_strided_slice %0 {offsets = [0, 3, 0], sizes = [2, 1, 128], strides = [1, 1, 1]} : vector<2x4x128xf32> to vector<2x1x128xf32>
    %100 = vector.shape_cast %99 : vector<2x1x128xf32> to vector<2x128xf32>
    %101 = vector.shape_cast %100 : vector<2x128xf32> to vector<2x1x128xf32>
    %102 = vector.extract_strided_slice %1 {offsets = [0, 3, 0], sizes = [2, 1, 128], strides = [1, 1, 1]} : vector<2x4x128xf32> to vector<2x1x128xf32>
    %103 = vector.shape_cast %102 : vector<2x1x128xf32> to vector<2x128xf32>
    %104 = vector.shape_cast %103 : vector<2x128xf32> to vector<2x1x128xf32>
    %105 = vector.extract_strided_slice %4 {offsets = [0, 3, 0], sizes = [2, 1, 128], strides = [1, 1, 1]} : vector<2x4x128xf32> to vector<2x1x128xf32>
    %106 = vector.shape_cast %105 : vector<2x1x128xf32> to vector<2x128xf32>
    %107 = vector.shape_cast %106 : vector<2x128xf32> to vector<2x1x128xf32>
    %108 = vector.extract_strided_slice %2 {offsets = [3, 0, 0], sizes = [1, 4, 128], strides = [1, 1, 1]} : vector<4x4x128xf32> to vector<1x4x128xf32>
    %109 = vector.shape_cast %108 : vector<1x4x128xf32> to vector<4x128xf32>
    %110 = vector.shape_cast %109 : vector<4x128xf32> to vector<1x4x128xf32>
    %111 = vector.extract_strided_slice %3 {offsets = [3, 0, 0], sizes = [1, 4, 128], strides = [1, 1, 1]} : vector<4x4x128xf32> to vector<1x4x128xf32>
    %112 = vector.shape_cast %111 : vector<1x4x128xf32> to vector<4x128xf32>
    %113 = vector.shape_cast %112 : vector<4x128xf32> to vector<1x4x128xf32>
    %114 = vector.extract_strided_slice %5 {offsets = [3, 0, 0], sizes = [1, 4, 128], strides = [1, 1, 1]} : vector<4x4x128xf32> to vector<1x4x128xf32>
    %115 = vector.shape_cast %114 : vector<1x4x128xf32> to vector<4x128xf32>
    %116 = vector.shape_cast %115 : vector<4x128xf32> to vector<1x4x128xf32>
    %117 = vector.broadcast %101 : vector<2x1x128xf32> to vector<2x4x128xf32>
    %118 = vector.broadcast %110 : vector<1x4x128xf32> to vector<2x4x128xf32>
    %119 = arith.mulf %117, %118 : vector<2x4x128xf32>
    %120 = arith.addf %90, %119 : vector<2x4x128xf32>
    %121 = vector.broadcast %104 : vector<2x1x128xf32> to vector<2x4x128xf32>
    %122 = vector.broadcast %113 : vector<1x4x128xf32> to vector<2x4x128xf32>
    %123 = arith.mulf %121, %122 : vector<2x4x128xf32>
    %124 = arith.addf %94, %123 : vector<2x4x128xf32>
    %125 = vector.broadcast %107 : vector<2x1x128xf32> to vector<2x4x128xf32>
    %126 = vector.broadcast %116 : vector<1x4x128xf32> to vector<2x4x128xf32>
    %127 = arith.mulf %125, %126 : vector<2x4x128xf32>
    %128 = arith.addf %98, %127 : vector<2x4x128xf32>
    %129 = arith.subf %120, %124 : vector<2x4x128xf32>
    %c0_13 = arith.constant 0 : index
    %c0_14 = arith.constant 0 : index
    %c0_15 = arith.constant 0 : index
    %130 = vector.load %arg5[%c0_13, %c0_14, %c0_15] : memref<2x4x128xf32, #tpu.memory_space<vmem>>, vector<2x4x128xf32>
    tpu.vector_store %arg5[%c0_13, %c0_14, %c0_15], %129 {strides = array<i32>} : memref<2x4x128xf32, #tpu.memory_space<vmem>>, vector<2x4x128xf32>,
    %131 = arith.subf %128, %120 : vector<2x4x128xf32>
    %132 = arith.subf %131, %124 : vector<2x4x128xf32>
    %c0_16 = arith.constant 0 : index
    %c0_17 = arith.constant 0 : index
    %c0_18 = arith.constant 0 : index
    %133 = vector.load %arg6[%c0_16, %c0_17, %c0_18] : memref<2x4x128xf32, #tpu.memory_space<vmem>>, vector<2x4x128xf32>
    tpu.vector_store %arg6[%c0_16, %c0_17, %c0_18], %132 {strides = array<i32>} : memref<2x4x128xf32, #tpu.memory_space<vmem>>, vector<2x4x128xf32>,
    return
  }
  func.func @transform_0(%arg0: i32) -> (i32, i32, i32) {
    %c0_i32 = arith.constant 0 : i32
    %c0_i32_0 = arith.constant 0 : i32
    %c0_i32_1 = arith.constant 0 : i32
    return %c0_i32, %c0_i32_0, %arg0 : i32, i32, i32
  }
  func.func @transform_1(%arg0: i32) -> (i32, i32, i32) {
    %c0_i32 = arith.constant 0 : i32
    %c0_i32_0 = arith.constant 0 : i32
    %c0_i32_1 = arith.constant 0 : i32
    return %c0_i32, %c0_i32_0, %arg0 : i32, i32, i32
  }
  func.func @transform_2(%arg0: i32) -> (i32, i32, i32) {
    %c0_i32 = arith.constant 0 : i32
    %c0_i32_0 = arith.constant 0 : i32
    %c0_i32_1 = arith.constant 0 : i32
    return %c0_i32, %c0_i32_0, %arg0 : i32, i32, i32
  }
  func.func @transform_3(%arg0: i32) -> (i32, i32, i32) {
    %c0_i32 = arith.constant 0 : i32
    %c0_i32_0 = arith.constant 0 : i32
    %c0_i32_1 = arith.constant 0 : i32
    return %c0_i32, %c0_i32_0, %arg0 : i32, i32, i32
  }
  func.func @transform_4(%arg0: i32) -> (i32, i32, i32) {
    %c0_i32 = arith.constant 0 : i32
    %c0_i32_0 = arith.constant 0 : i32
    %c0_i32_1 = arith.constant 0 : i32
    return %c0_i32, %c0_i32_0, %arg0 : i32, i32, i32
  }
  func.func @transform_5(%arg0: i32) -> (i32, i32, i32) {
    %c0_i32 = arith.constant 0 : i32
    %c0_i32_0 = arith.constant 0 : i32
    %c0_i32_1 = arith.constant 0 : i32
    return %c0_i32, %c0_i32_0, %arg0 : i32, i32, i32
  }
}

</mosaic_0001>

<bundles_post_ra>
// kernel: spectral_conv2d_fast.1
= control target key start
LH: loop header
LB: loop body
LE: loop exit
PB: predicated region body
PF: predicated region fallthrough
CT: control target
= control target key end

     0   :  { %v37_v0 = vlaneseq  ;;  %s337_s0 = inlined_call_operand.vmem [shape: f32[2,4,128], index: 0, kind: input, shape index: {}]   ;;  %s338_s1 = inlined_call_operand.vmem [shape: f32[2,4,128], index: 1, kind: input, shape index: {}]   ;;  %s339_s2 = inlined_call_operand.vmem [shape: f32[4,4,128], index: 2, kind: input, shape index: {}]   ;;  %s340_s3 = inlined_call_operand.vmem [shape: f32[4,4,128], index: 3, kind: input, shape index: {}]   ;;  %s341_s4 = inlined_call_operand.vmem [shape: f32[2,4,128], index: 4, kind: output, shape index: {0}]   ;;  %s342_s5 = inlined_call_operand.vmem [shape: f32[2,4,128], index: 5, kind: output, shape index: {1}]  }
   0x1   :  { %v19_v1 = vld [vmem:[%s337_s0] sm:$0xf]  ;;  %v24_v4 = vld [vmem:[%s339_s2 + $0x4] sm:$0xf]  ;;  %v25_v5 = vld [vmem:[%s339_s2 + $0x8] sm:$0xf] }
   0x2   :  { %v21_v2 = vld [vmem:[%s338_s1] sm:$0xf]  ;;  %v26_v6 = vld [vmem:[%s339_s2 + $0xc] sm:$0xf]  ;;  %v28_v8 = vld [vmem:[%s340_s3 + $0x4] sm:$0xf] }
   0x3   :  { %v23_v3 = vld [vmem:[%s339_s2] sm:$0xf]  ;;  %v29_v9 = vld [vmem:[%s340_s3 + $0x8] sm:$0xf]  ;;  %v30_v10 = vld [vmem:[%s340_s3 + $0xc] sm:$0xf]  ;;  %v265_v14 = vadd.f32 %v21_v2, %v19_v1  ;;  %v277_v20 = vadd.f32 %v28_v8, %v24_v4 }
   0x4   :  { %v27_v7 = vld [vmem:[%s340_s3] sm:$0xf]  ;;  %v38_v11 = vshrl.u32 %v37_v0, 7  ;;  %v20_v12 = vld [vmem:[%s337_s0 + $0x4] sm:$0xf]  ;;  %v279_v21 = vadd.f32 %v29_v9, %v25_v5  ;;  %v281_v22 = vadd.f32 %v30_v10, %v26_v6 }
   0x5   :  { %v22_v13 = vld [vmem:[%s338_s1 + $0x4] sm:$0xf]  ;;  %v267_v15 = vadd.f32 %v27_v7, %v23_v3 }
   0x6   :  { %v269_v16 = vsub.s32 0, %v38_v11  ;;  %v271_v17 = vsub.s32 1, %v38_v11  ;;  %v273_v18 = vsub.s32 2, %v38_v11  ;;  %v275_v19 = vsub.s32 3, %v38_v11 }
   0x7   :  { %v283_v23 = vadd.f32 %v22_v13, %v20_v12 }
   0x8   :  { %v40_v24 = vrot.slane %v19_v1, %v269_v16  ;;  %v52_v25 = vrot.slane %v21_v2, %v269_v16  ;;  %v76_v26 = vrot.slane %v19_v1, %v271_v17  ;;  %v88_v27 = vrot.slane %v21_v2, %v271_v17 }
   0x9   :  { %v112_v28 = vrot.slane %v19_v1, %v273_v18  ;;  %v124_v29 = vrot.slane %v21_v2, %v273_v18  ;;  %v148_v30 = vrot.slane %v19_v1, %v275_v19  ;;  %v160_v31 = vrot.slane %v21_v2, %v275_v19 }
   0xa   :  { %v45_v32 = vmul.f32 %v40_v24, %v23_v3  ;;  %v57_v33 = vmul.f32 %v52_v25, %v27_v7  ;;  %v81_v34 = vmul.f32 %v76_v26, %v24_v4  ;;  %v93_v35 = vmul.f32 %v88_v27, %v28_v8 }
   0xb   :  { %v117_v36 = vmul.f32 %v112_v28, %v25_v5  ;;  %v129_v37 = vmul.f32 %v124_v29, %v29_v9  ;;  %v153_v38 = vmul.f32 %v148_v30, %v26_v6  ;;  %v165_v39 = vmul.f32 %v160_v31, %v30_v10 }
   0xc   :  { %v83_v40 = vadd.f32 %v81_v34, %v45_v32  ;;  %v95_v41 = vadd.f32 %v93_v35, %v57_v33  ;;  %v44_v42 = vrot.slane %v20_v12, %v269_v16  ;;  %v56_v43 = vrot.slane %v22_v13, %v269_v16 }
   0xd   :  { %v80_v44 = vrot.slane %v20_v12, %v271_v17  ;;  %v92_v45 = vrot.slane %v22_v13, %v271_v17  ;;  %v116_v46 = vrot.slane %v20_v12, %v273_v18  ;;  %v128_v47 = vrot.slane %v22_v13, %v273_v18 }
   0xe   :  { %v119_v48 = vadd.f32 %v117_v36, %v83_v40  ;;  %v131_v49 = vadd.f32 %v129_v37, %v95_v41  ;;  %v46_v50 = vmul.f32 %v44_v42, %v23_v3  ;;  %v58_v51 = vmul.f32 %v56_v43, %v27_v7 }
   0xf   :  { %v82_v52 = vmul.f32 %v80_v44, %v24_v4  ;;  %v94_v53 = vmul.f32 %v92_v45, %v28_v8  ;;  %v118_v54 = vmul.f32 %v116_v46, %v25_v5  ;;  %v130_v55 = vmul.f32 %v128_v47, %v29_v9 }
  0x10   :  { %v155_v56 = vadd.f32 %v153_v38, %v119_v48  ;;  %v167_v57 = vadd.f32 %v165_v39, %v131_v49  ;;  %v152_v58 = vrot.slane %v20_v12, %v275_v19  ;;  %v164_v59 = vrot.slane %v22_v13, %v275_v19 }
  0x11   :  { %v84_v60 = vadd.f32 %v82_v52, %v46_v50  ;;  %v96_v61 = vadd.f32 %v94_v53, %v58_v51  ;;  %v64_v62 = vrot.slane %v265_v14, %v269_v16  ;;  %v100_v63 = vrot.slane %v265_v14, %v271_v17 }
  0x12   :  { %v181_v0 = vsub.f32 %v155_v56, %v167_v57  ;;  %v154_v1 = vmul.f32 %v152_v58, %v26_v6  ;;  %v166_v2 = vmul.f32 %v164_v59, %v30_v10  ;;  %v136_v3 = vrot.slane %v265_v14, %v273_v18 }
  0x13   :  { %v120_v4 = vadd.f32 %v118_v54, %v84_v60  ;;  %v132_v5 = vadd.f32 %v130_v55, %v96_v61  ;;  %v69_v7 = vmul.f32 %v64_v62, %v267_v15  ;;  %v105_v8 = vmul.f32 %v100_v63, %v277_v20 }
  0x14   :  { %183 = vst [vmem:[%s341_s4] sm:$0xf] %v181_v0  ;;  %v141_v9 = vmul.f32 %v136_v3, %v279_v21  ;;  %v172_v11 = vrot.slane %v265_v14, %v275_v19  ;;  %v68_v6 = vrot.slane %v283_v23, %v269_v16  ;;  %v104_v10 = vrot.slane %v283_v23, %v271_v17 }
  0x15   :  { %v156_v12 = vadd.f32 %v154_v1, %v120_v4  ;;  %v168_v13 = vadd.f32 %v166_v2, %v132_v5  ;;  %v107_v24 = vadd.f32 %v105_v8, %v69_v7  ;;  %v140_v25 = vrot.slane %v283_v23, %v273_v18 }
  0x16   :  { %v177_v26 = vmul.f32 %v172_v11, %v281_v22  ;;  %v70_v27 = vmul.f32 %v68_v6, %v267_v15  ;;  %v106_v28 = vmul.f32 %v104_v10, %v277_v20  ;;  %v176_v14 = vrot.slane %v283_v23, %v275_v19 }
  0x17   :  { %v182_v29 = vsub.f32 %v156_v12, %v168_v13  ;;  %v143_v16 = vadd.f32 %v141_v9, %v107_v24  ;;  %v142_v30 = vmul.f32 %v140_v25, %v279_v21 }
  0x18   :  { %v108_v17 = vadd.f32 %v106_v28, %v70_v27  ;;  %v178_v31 = vmul.f32 %v176_v14, %v281_v22 }
  0x19   :  { %184 = vst [vmem:[%s341_s4 + $0x4] sm:$0xf] %v182_v29  ;;  %v179_v18 = vadd.f32 %v177_v26, %v143_v16 }
  0x1a   :  { %v144_v32 = vadd.f32 %v142_v30, %v108_v17 }
  0x1b   :  { %v185_v33 = vsub.f32 %v179_v18, %v155_v56 }
  0x1c   :  { %v180_v15 = vadd.f32 %v178_v31, %v144_v32 }
  0x1d   :  { %v187_v34 = vsub.f32 %v185_v33, %v167_v57 }
  0x1e   :  { %v186_v20 = vsub.f32 %v180_v15, %v156_v12 }
  0x1f   :  { %189 = vst [vmem:[%s342_s5] sm:$0xf] %v187_v34 }
  0x20   :  { %v188_v19 = vsub.f32 %v186_v20, %v168_v13 }
  0x22   :  { %190 = vst [vmem:[%s342_s5 + $0x4] sm:$0xf] %v188_v19 }

// kernel: reverse.0
= control target key start
LH: loop header
LB: loop body
LE: loop exit
PB: predicated region body
PF: predicated region fallthrough
CT: control target
= control target key end

     0   :  { %v72_v3 = vlaneseq  ;;  %v65_v9 = vld [vmem:[#allocation0 + $0x7] ss:$-1 sm:$0xff]  ;;  %v79_v12 = vld [vmem:[#allocation0 + $0x17] ss:$-1 sm:$0xff]  ;;  %s331_s0 = inlined_call_operand.vmem [shape: f32[2,4,16,7], index: 0, kind: input, shape index: {}]   ;;  %s332_s1 = inlined_call_operand.vmem [shape: f32[2,4,16,7], index: 1, kind: output, shape index: {}]  }
   0x1   :  { %v45_v0 = vld [vmem:[%s331_s0] sm:$0xff]  ;;  %v47_v1 = vld [vmem:[%s331_s0 + $0x8] sm:$0xff]  ;;  %v49_v2 = vld [vmem:[%s331_s0 + $0x10] sm:$0xff]  ;;  %v66_v10 = vrot.slane %v65_v9, 1  ;;  %v80_v14 = vrot.slane %v79_v12, 1 }
   0x2   :  { %46 = vst [vmem:[#allocation0 + $0x8] sm:$0xff] %v45_v0  ;;  %48 = vst [vmem:[#allocation0 + $0x18] sm:$0xff] %v47_v1  ;;  %v51_v4 = vld [vmem:[%s331_s0 + $0x18] sm:$0xff]  ;;  %v53_v5 = vld [vmem:[%s331_s0 + $0x20] sm:$0xff]  ;;  %v73_v11 = vshrl.u32 %v72_v3, 7 }
   0x3   :  { %50 = vst [vmem:[#allocation0 + $0x28] sm:$0xff] %v49_v2  ;;  %v55_v6 = vld [vmem:[%s331_s0 + $0x28] sm:$0xff]  ;;  %52 = vst [vmem:[#allocation0 + $0x38] sm:$0xff] %v51_v4  ;;  %v57_v7 = vld [vmem:[%s331_s0 + $0x30] sm:$0xff] }
   0x4   :  { %54 = vst [vmem:[#allocation0 + $0x48] sm:$0xff] %v53_v5  ;;  %56 = vst [vmem:[#allocation0 + $0x58] sm:$0xff] %v55_v6  ;;  %v59_v8 = vld [vmem:[%s331_s0 + $0x38] sm:$0xff]  ;;  %v93_v13 = vld [vmem:[#allocation0 + $0x27] ss:$-1 sm:$0xff]  ;;  %vm74_vm0 = vcmp.lt.s32.totalorder %v73_v11, 7 }
   0x5   :  { %58 = vst [vmem:[#allocation0 + $0x68] sm:$0xff] %v57_v7  ;;  %60 = vst [vmem:[#allocation0 + $0x78] sm:$0xff] %v59_v8  ;;  %v94_v15 = vrot.slane %v93_v13, 1  ;;  %v107_v16 = vld [vmem:[#allocation0 + $0x37] ss:$-1 sm:$0xff] }
   0x6   :  { %67 = vst [vmem:[#allocation1] sm:$0xff] %v66_v10  ;;  %v108_v17 = vrot.slane %v107_v16, 1  ;;  %v121_v18 = vld [vmem:[#allocation0 + $0x47] ss:$-1 sm:$0xff]  ;;  %v135_v19 = vld [vmem:[#allocation0 + $0x57] ss:$-1 sm:$0xff] }
   0x7   :  { %81 = vst [vmem:[#allocation1 + $0x8] sm:$0xff] %v80_v14  ;;  %95 = vst [vmem:[#allocation1 + $0x10] sm:$0xff] %v94_v15  ;;  %v122_v20 = vrot.slane %v121_v18, 1  ;;  %v136_v21 = vrot.slane %v135_v19, 1  ;;  %v149_v22 = vld [vmem:[#allocation0 + $0x67] ss:$-1 sm:$0xff] }
   0x8   :  { %v163_v23 = vld [vmem:[#allocation0 + $0x77] ss:$-1 sm:$0xff]  ;;  %109 = vst [vmem:[#allocation1 + $0x18] sm:$0xff] %v108_v17  ;;  %v150_v24 = vrot.slane %v149_v22, 1 }
   0x9   :  { %v164_v25 = vrot.slane %v163_v23, 1  ;;  %v70_v26 = vld [vmem:[#allocation0 + $0xf] ss:$-1 sm:$0xff]  ;;  %v84_v27 = vld [vmem:[#allocation0 + $0x1f] ss:$-1 sm:$0xff]  ;;  %123 = vst [vmem:[#allocation1 + $0x20] sm:$0xff] %v122_v20 }
   0xa   :  { %v98_v28 = vld [vmem:[#allocation0 + $0x2f] ss:$-1 sm:$0xff]  ;;  %137 = vst [vmem:[#allocation1 + $0x28] sm:$0xff] %v136_v21  ;;  %v71_v29 = vrot.slane %v70_v26, 1  ;;  %v85_v30 = vrot.slane %v84_v27, 1  ;;  %151 = vst [vmem:[#allocation1 + $0x30] sm:$0xff] %v150_v24 }
   0xb   :  { %v99_v31 = vrot.slane %v98_v28, 1  ;;  %v112_v32 = vld [vmem:[#allocation0 + $0x3f] ss:$-1 sm:$0xff]  ;;  %165 = vst [vmem:[#allocation1 + $0x38] sm:$0xff] %v164_v25  ;;  %v126_v34 = vld [vmem:[#allocation0 + $0x4f] ss:$-1 sm:$0xff] }
   0xc   :  { %v113_v33 = vrot.slane %v112_v32, 1  ;;  %v140_v35 = vld [vmem:[#allocation0 + $0x5f] ss:$-1 sm:$0xff]  ;;  %75 = vst.msk [vmem:[#allocation1] sm:$0xff] %vm74_vm0, %v71_v29  ;;  %89 = vst.msk [vmem:[#allocation1 + $0x8] sm:$0xff] %vm74_vm0, %v85_v30  ;;  %v127_v36 = vrot.slane %v126_v34, 1 }
   0xd   :  { %103 = vst.msk [vmem:[#allocation1 + $0x10] sm:$0xff] %vm74_vm0, %v99_v31  ;;  %v141_v37 = vrot.slane %v140_v35, 1  ;;  %v154_v38 = vld [vmem:[#allocation0 + $0x6f] ss:$-1 sm:$0xff]  ;;  %v168_v39 = vld [vmem:[#allocation0 + $0x7f] ss:$-1 sm:$0xff] }
   0xe   :  { %117 = vst.msk [vmem:[#allocation1 + $0x18] sm:$0xff] %vm74_vm0, %v113_v33  ;;  %v155_v40 = vrot.slane %v154_v38, 1  ;;  %v169_v41 = vrot.slane %v168_v39, 1  ;;  %131 = vst.msk [vmem:[#allocation1 + $0x20] sm:$0xff] %vm74_vm0, %v127_v36 }
   0xf   :  { %145 = vst.msk [vmem:[#allocation1 + $0x28] sm:$0xff] %vm74_vm0, %v141_v37 }
  0x10   :  { %159 = vst.msk [vmem:[#allocation1 + $0x30] sm:$0xff] %vm74_vm0, %v155_v40  ;;  %173 = vst.msk [vmem:[#allocation1 + $0x38] sm:$0xff] %vm74_vm0, %v169_v41 }
  0x13   :  { %v216_v42 = vld [vmem:[#allocation1] sm:$0xff]  ;;  %v218_v43 = vld [vmem:[#allocation1 + $0x8] sm:$0xff] }
  0x14   :  { %v220_v44 = vld [vmem:[#allocation1 + $0x10] sm:$0xff]  ;;  %217 = vst [vmem:[%s332_s1] sm:$0xff] %v216_v42  ;;  %219 = vst [vmem:[%s332_s1 + $0x8] sm:$0xff] %v218_v43 }
  0x15   :  { %221 = vst [vmem:[%s332_s1 + $0x10] sm:$0xff] %v220_v44  ;;  %v222_v45 = vld [vmem:[#allocation1 + $0x18] sm:$0xff]  ;;  %v224_v46 = vld [vmem:[#allocation1 + $0x20] sm:$0xff] }
  0x16   :  { %223 = vst [vmem:[%s332_s1 + $0x18] sm:$0xff] %v222_v45  ;;  %v226_v47 = vld [vmem:[#allocation1 + $0x28] sm:$0xff]  ;;  %225 = vst [vmem:[%s332_s1 + $0x20] sm:$0xff] %v224_v46 }
  0x17   :  { %227 = vst [vmem:[%s332_s1 + $0x28] sm:$0xff] %v226_v47  ;;  %v228_v48 = vld [vmem:[#allocation1 + $0x30] sm:$0xff]  ;;  %v230_v49 = vld [vmem:[#allocation1 + $0x38] sm:$0xff] }
  0x18   :  { %229 = vst [vmem:[%s332_s1 + $0x30] sm:$0xff] %v228_v48  ;;  %231 = vst [vmem:[%s332_s1 + $0x38] sm:$0xff] %v230_v49 }

</bundles_post_ra>
